<compile_context>
chip_gen: v6e
topology: v6e:2x2x1
jax: 0.10.0
libtpu: 0.0.40
codegen_flags: <defaults>
</compile_context>

<pallas_src>
import functools

import jax
import jax.numpy as jnp
from jax.experimental import pallas as pl
from jax.experimental.pallas import tpu as pltpu

# Static hyperparameters (mirror argparse defaults commonly used with this script).
ALPH = 2.0    # args.alph
EPS = 0.031   # args.eps
LAMBD0 = 1.0  # args.lambd  (initial value of nn.Parameter lambda_)
NU0 = 0.0     # args.nu     (initial value of nn.Parameter nu)

_LANES = 128
_SUBLANES = 8
_PAD_TO = _SUBLANES * _LANES  # 1024 -> rows multiple of 8 (full f32 vregs)


def _min_loss_kernel(scal_ref, loss_ref, out_ref, *, alph, eps, n):
    # Packed scalars from SMEM: [lambda_, nu].
    lam = scal_ref[0]
    nu = scal_ref[1]
    inv_lam = 1.0 / lam                     # single exact scalar reciprocal

    # y = base/lam - nu/lam == (base - nu) * inv_lam   (per-sample), f32 (rows, 128).
    # Padded entries were filled with `nu` wrapper-side -> y == 0 -> relu(y)^p == 0,
    # so they contribute nothing to the sum (no in-kernel mask needed).
    y = (loss_ref[...] - nu) * inv_lam
    relu_y = jnp.maximum(y, 0.0)

    # f_star(y, alph) = coef * relu(y)^p + const,  p = alph/(alph-1).
    p = alph / (alph - 1.0)                         # python constants, folded
    coef = (1.0 / alph) * (alph - 1.0) ** p
    const = 1.0 / (alph * (alph - 1.0))

    if p == 2.0:
        # Default alph=2: plain VALU multiply, no EUP pow.
        pow_y = relu_y * relu_y
    elif p == float(int(p)) and 1 <= int(p) <= 4:
        pow_y = relu_y
        for _ in range(int(p) - 1):
            pow_y = pow_y * relu_y
    else:
        pow_y = relu_y ** p                         # fallback: EUP exp/log path

    # mean over the n real samples; the per-element `const` contributes exactly
    # `const` to the mean, so add it once as a scalar.
    mean_f = coef * (jnp.sum(pow_y) * (1.0 / n)) + const

    # minLoss = eps*lambda + nu + lambda * mean(f_star(...))
    out_ref[0, 0] = eps * lam + nu + lam * mean_f


def min_loss_fdiv_symmetric(base_losses, lambda_, nu, *, alph=ALPH, eps=EPS):
    """base_losses: (N,) f32 per-sample MART losses.  lambda_, nu: scalar params."""
    n = base_losses.shape[0]

    # Sublane/lane-dense layout: pad to a multiple of 1024, reshape to (rows, 128).
    padded = max(_PAD_TO, pl.cdiv(n, _PAD_TO) * _PAD_TO)
    rows = padded // _LANES

    losses_f32 = base_losses.astype(jnp.float32)
    lam_f32 = jnp.asarray(lambda_, jnp.float32)
    nu_f32 = jnp.asarray(nu, jnp.float32)

    if padded > n:
        # Fill padding with `nu` so padded entries transform to exactly zero in-kernel.
        fill = jnp.full((padded - n,), nu_f32, dtype=jnp.float32)
        losses_f32 = jnp.concatenate([losses_f32, fill])
    loss_slab = losses_f32.reshape(rows, _LANES)

    # Pack the two trainable scalars into one SMEM operand.
    scal = jnp.stack([lam_f32, nu_f32])

    kernel = functools.partial(_min_loss_kernel, alph=float(alph), eps=float(eps),
                               n=int(n))

    out = pl.pallas_call(
        kernel,
        out_shape=jax.ShapeDtypeStruct((1, 1), jnp.float32),
        in_specs=[
            pl.BlockSpec(memory_space=pltpu.SMEM),          # [lambda_, nu]
            pl.BlockSpec((rows, _LANES), lambda: (0, 0)),   # loss slab (full block, VMEM)
        ],
        out_specs=pl.BlockSpec(memory_space=pltpu.SMEM),
    )(scal, loss_slab)
    return out[0, 0]


def _reference(base_losses, lambda_, nu, alph=ALPH, eps=EPS):
    max_loss = base_losses / lambda_
    y = max_loss - nu / lambda_
    p = alph / (alph - 1.0)
    f = (1.0 / alph) * (alph - 1.0) ** p * jnp.maximum(y, 0.0) ** p \
        + 1.0 / (alph * (alph - 1.0))
    return eps * lambda_ + nu + lambda_ * jnp.mean(f)


if __name__ == "__main__":
    key = jax.random.PRNGKey(0)
    N = 256  # number of per-sample losses (e.g. batch size of the MART training step)

    # Deterministic synthetic per-sample MART base losses (stand-in for
    # mart_loss(model, x_natural, y, optimizer, ...), which is untranslatable here).
    base_losses = jax.random.uniform(key, (N,), dtype=jnp.float32, minval=0.0, maxval=3.0)

    # Learnable scalar parameters, initialized deterministically from hyperparams.
    lambda_ = jnp.float32(LAMBD0)
    nu = jnp.float32(NU0)

    out = min_loss_fdiv_symmetric(base_losses, lambda_, nu)
    out = jax.block_until_ready(out)

    ref = _reference(base_losses, lambda_, nu)
    assert jnp.allclose(out, ref, rtol=1e-5, atol=1e-5), (out, ref)

    # TODO(synk): mart_loss (model forward, PGD attack, optimizer), the stochastic
    # logging print, and the custom_vjp needed for training lambda_/nu are not
    # implemented in-kernel (forward-only).
    print("KERNEL_OK")
</pallas_src>

<mosaic_0001>
module attributes {stable_mosaic.version = 11 : i64} {
  func.func @_min_loss_kernel(%arg0: memref<2xf32, #tpu.memory_space<smem>>, %arg1: memref<8x128xf32, #tpu.memory_space<vmem>>, %arg2: memref<1x1xf32, #tpu.memory_space<smem>>) attributes {dimension_semantics = [], scalar_prefetch = 0 : i64, scratch_operands = 0 : i64, tpu.core_type = #tpu.core_type<tc>} {
    %c0 = arith.constant 0 : index
    %0 = memref.load %arg0[%c0] : memref<2xf32, #tpu.memory_space<smem>>
    %c1 = arith.constant 1 : index
    %1 = memref.load %arg0[%c1] : memref<2xf32, #tpu.memory_space<smem>>
    %cst = arith.constant 1.000000e+00 : f32
    %2 = arith.divf %cst, %0 : f32
    %c0_0 = arith.constant 0 : index
    %c0_1 = arith.constant 0 : index
    %3 = vector.load %arg1[%c0_0, %c0_1] : memref<8x128xf32, #tpu.memory_space<vmem>>, vector<8x128xf32>
    %4 = vector.broadcast %1 : f32 to vector<8x128xf32>
    %5 = arith.subf %3, %4 : vector<8x128xf32>
    %6 = vector.broadcast %2 : f32 to vector<8x128xf32>
    %7 = arith.mulf %5, %6 : vector<8x128xf32>
    %cst_2 = arith.constant 0.000000e+00 : f32
    %8 = vector.broadcast %cst_2 : f32 to vector<8x128xf32>
    %9 = arith.maximumf %7, %8 : vector<8x128xf32>
    %10 = arith.mulf %9, %9 : vector<8x128xf32>
    %11 = vector.shape_cast %10 : vector<8x128xf32> to vector<1x8x128xf32>
    %cst_3 = arith.constant dense<0.000000e+00> : vector<1xf32>
    %12 = vector.multi_reduction <add>, %11, %cst_3 [1, 2] : vector<1x8x128xf32> to vector<1xf32>
    %13 = vector.shape_cast %12 : vector<1xf32> to vector<1x1x1xf32>
    %14 = vector.extract %13[0, 0, 0] : f32 from vector<1x1x1xf32>
    %cst_4 = arith.constant 3.906250e-03 : f32
    %15 = arith.mulf %14, %cst_4 : f32
    %cst_5 = arith.constant 5.000000e-01 : f32
    %16 = arith.mulf %cst_5, %15 : f32
    %cst_6 = arith.constant 5.000000e-01 : f32
    %17 = arith.addf %16, %cst_6 : f32
    %cst_7 = arith.constant 3.100000e-02 : f32
    %18 = arith.mulf %cst_7, %0 : f32
    %19 = arith.addf %18, %1 : f32
    %20 = arith.mulf %0, %17 : f32
    %21 = arith.addf %19, %20 : f32
    %c0_8 = arith.constant 0 : index
    %c0_9 = arith.constant 0 : index
    %22 = memref.load %arg2[%c0_8, %c0_9] : memref<1x1xf32, #tpu.memory_space<smem>>
    memref.store %21, %arg2[%c0_8, %c0_9] : memref<1x1xf32, #tpu.memory_space<smem>>
    return
  }
}

</mosaic_0001>

<bundles_post_ra>
// kernel: tpu_custom_call.1
= control target key start
LH: loop header
LB: loop body
LE: loop exit
PB: predicated region body
PF: predicated region fallthrough
CT: control target
= control target key end

     0   :  { %7 = vsyncpa [#allocation4], 0  ;;  %s164_s0 = inlined_call_operand.hbm [shape: f32[2], index: 0, kind: input, shape index: {}]   ;;  %s165_s1 = inlined_call_operand.hbm [shape: f32[8,128], index: 1, kind: input, shape index: {}]   ;;  %s166_s2 = inlined_call_operand.hbm [shape: f32[1,1], index: 2, kind: output, shape index: {}]  }
   0x1   :  { %8 = vsyncpa [#allocation3], 0 }
   0x2   :  { %9 = vsyncpa [#allocation5], 0  ;;  %s132_s9 = smov [#allocation2]   ;;  %s133_s12 = smov [#allocation6]  }
   0x3   :  { %17 = dma.hbm_to_smem %s164_s0, 16, %s132_s9, [#allocation4]  }
   0x4   :  { %s24_s13 = sshll.u32 %s133_s12, 4  ;;  %s25_s13 = int_to_ptr.vmem [resolvable:$true] %s24_s13 }
   0x5   :  { %s106_s14 = scalar_lea.vmem %s25_s13, 128  ;;  %p111_p1 = scmp.lt.s32.totalorder %s25_s13, %s25_s13 }
   0x6   :  { %p107_p0 = scmp.ne.s32.totalorder %s25_s13, %s106_s14  ;;  %p112_p2 = scmp.lt.s32.totalorder %s106_s14, %s106_s14 }
   0x8   :  { %p113_p3 = por %p112_p2, %p111_p1 }
   0xa   :  { %p114_p4 = pnand %p113_p3, %p107_p0 }
   0xc   :  { %117 = shalt.err (!%p114_p4)
}
   0xd   :  { %27 = dma.hbm_to_vmem [thread:$0]  %s165_s1, 128, %s25_s13, [#allocation3]  }
   0xe   :  { %126 = dma.done.wait [#allocation4], 16  }
   0xf   :  { %127 = vsyncadd [#allocation4], 4294967280 }
  0x10   :  { %128 = dma.done.wait [#allocation3], 128  }
  0x11   :  { %129 = vsyncadd [#allocation3], 4294967168 }
  0x12   :  { %34 = sfence }
  0x13   :  { %s156_s0 = sld [smem:[#allocation2]]  ;;  %v40_v2 = vld [vmem:[#allocation6] sm:$0xff]  ;;  %s134_s26 = smov [#allocation7]  }
  0x14   :  { %s80_s17 = sld [smem:[#allocation2 + $0x1]] }
  0x19   :  { %v37_v0 = vstv %s156_s0  ;;  %s59_s19 = smul.f32 0.031, %s156_s0 }
  0x1a   :  { %88 = vrcp.f32 %v37_v0  ;;  %v41_v3 = vstv %s80_s17 }
  0x1b   :  { %v42_v4 = vsub.f32 %v40_v2, %v41_v3  ;;  %s60_s22 = sadd.f32 %s80_s17, %s59_s19 }
  0x27   :  { %v89_v1 = vpop.eup %88 }
  0x28   :  { %81 = vpush %v89_v1 }
  0x59   :  { %s82_s18 = spop %81 }
  0x5a   :  { %v43_v5 = vstv %s82_s18 }
  0x5b   :  { %v44_v6 = vmul.f32 %v43_v5, %v42_v4 }
  0x5d   :  { %v45_v7 = vmax.f32 %v44_v6, 0.0 }
  0x5f   :  { %v46_v8 = vmul.f32 %v45_v7, %v45_v7 }
  0x61   :  { %47 = vadd.xlane.f32.xlu0 %v46_v8 }
  0xea   :  { %v48_v9 = vpop.xlane.xlu0 %47 }
  0xeb   :  { %v49_v10 = vrot.slane %v48_v9, 4 }
  0xed   :  { %v50_v11 = vadd.f32 %v49_v10, %v48_v9 }
  0xef   :  { %v51_v12 = vrot.slane %v50_v11, 2 }
  0xf1   :  { %v52_v13 = vadd.f32 %v51_v12, %v50_v11 }
  0xf3   :  { %v53_v14 = vrot.slane %v52_v13, 1 }
  0xf5   :  { %v54_v15 = vadd.f32 %v53_v14, %v52_v13 }
  0xf7   :  { %83 = vpush %v54_v15 }
 0x128   :  { %s84_s1 = spop %83 }
 0x129   :  { %s56_s20 = smul.f32 0.00390625, %s84_s1 }
 0x12b   :  { %s57_s21 = smul.f32 0.5, %s56_s20 }
 0x12d   :  { %s58_s23 = sadd.f32 0.5, %s57_s21 }
 0x12f   :  { %s61_s24 = smul.f32 %s58_s23, %s156_s0 }
 0x131   :  { %s62_s25 = sadd.f32 %s61_s24, %s60_s22 }
 0x133   :  { %64 = sst [smem:[#allocation7]] %s62_s25 }
 0x134   :  { %72 = dma.smem_to_hbm %s134_s26, 16, %s166_s2, [#allocation5]  }
 0x135   :  { %130 = dma.done.wait [#allocation5], 16  }
 0x136   :  { %131 = vsyncadd [#allocation5], 4294967280 }
 0x137   :  { %76 = sfence }
 0x138   :  { %77 = vsyncpa [#allocation3], 1 }
 0x139   :  { %78 = vsyncpa [#allocation4], 1 }
 0x13a   :  { %79 = vsyncpa [#allocation5], 1 }

</bundles_post_ra>
